<compile_context>
chip_gen: v7x
topology: tpu7x:2x2x1
jax: 0.10.0
libtpu: 0.0.40
codegen_flags: <defaults>
</compile_context>

<pallas_src>
import jax
import jax.numpy as jnp
from jax.experimental import pallas as pl
from jax.experimental.pallas import tpu as pltpu

LANE = 128  # TPU lane width; hidden/output dims are zero-padded to this


def gin_conv_kernel(a_ref, x_ref, pool_ref,
                    w1_ref, b1_ref, w2_ref, b2_ref,
                    hg_ref):
    # a_ref    : [tile_m, tile_m] bf16 block-diag (adj + (1+eps) I) — exact values.
    # x_ref    : [tile_m, F]      bf16 node features (feature dim NOT padded).
    # pool_ref : [gpt, tile_m]    bf16 0/1 node->graph membership.
    # w*_ref bf16, b*_ref f32. All accumulation / elementwise math stays f32.

    # --- GINConv 1: neighbor + (1+eps)*self aggregation folded into one matmul.
    agg1 = jnp.dot(a_ref[...], x_ref[...], preferred_element_type=jnp.float32)
    h1 = jnp.dot(agg1.astype(w1_ref.dtype), w1_ref[...],
                 preferred_element_type=jnp.float32) + b1_ref[...]
    h1 = jnp.maximum(h1, 0.0)

    # --- GINConv 2
    agg2 = jnp.dot(a_ref[...], h1.astype(a_ref.dtype),
                   preferred_element_type=jnp.float32)
    h2 = jnp.dot(agg2.astype(w2_ref.dtype), w2_ref[...],
                 preferred_element_type=jnp.float32) + b2_ref[...]
    h2 = jnp.maximum(h2, 0.0)

    # --- SumPooling over nodes as an MXU matmul (reduction stays off the XLU).
    hg_ref[...] = jnp.dot(pool_ref[...], h2.astype(pool_ref.dtype),
                          preferred_element_type=jnp.float32)


def mlp_head_kernel(hg_ref, w3_ref, b3_ref, w4_ref, b4_ref, out_ref):
    # Runs once over all B pooled graph vectors (M = B), not per graph-tile.
    z = jnp.dot(hg_ref[...].astype(w3_ref.dtype), w3_ref[...],
                preferred_element_type=jnp.float32) + b3_ref[...]
    z = jnp.maximum(z, 0.0)
    # TODO(synk): nn.Dropout(0.5) is identity in eval mode; training-mode dropout
    # (pltpu.prng_random_bits mask) is not implemented here.
    logit = jnp.dot(z.astype(w4_ref.dtype), w4_ref[...],
                    preferred_element_type=jnp.float32) + b4_ref[...]
    # Lane-dense [B, 128] store; column 0 is the real output.
    out_ref[...] = jax.nn.sigmoid(logit)


def _round_up(v, m):
    return ((v + m - 1) // m) * m


def _pick_graphs_per_tile(batch, nodes, max_tile_nodes=128):
    """Largest divisor of `batch` whose tile (gpt * nodes rows) stays <= cap.

    Note: a prime batch degrades to gpt=1 (tiny tiles); pad the batch on the
    caller side if that matters.  128 rows keeps both v7x TensorCores busy and
    bounds the block-diag A cost (which grows ~quadratically with gpt).
    """
    if nodes > max_tile_nodes:
        raise ValueError(f"N={nodes} exceeds the {max_tile_nodes}-row tile cap; "
                         "split graphs or raise the cap explicitly.")
    best = 1
    for d in range(1, batch + 1):
        if batch % d == 0 and d * nodes <= max_tile_nodes:
            best = d
    return best


def gin_forward(adj, x, params, *, eps=0.0):
    """adj: [B, N, N] 0/1 dense adjacency, x: [B, N, F]. Returns [B, 1] float32."""
    B, N, F = x.shape
    H = params['w1'].shape[1]

    gpt = _pick_graphs_per_tile(B, N)        # graphs per grid step
    T = B // gpt                             # grid size (parallel over tiles)
    tile_m = gpt * N                         # flattened node rows per grid step
    h_pad = _round_up(H, LANE)

    # A's values are 0 / 1 / (1+eps): bf16 is exact only when (1+eps) is
    # representable (true for the DGL default eps=0).  Otherwise fall back to
    # f32 for the edge-side operands to keep the self-term exact.
    exact_bf16 = float(jnp.bfloat16(1.0 + eps)) == float(1.0 + eps)
    edge_dtype = jnp.bfloat16 if exact_bf16 else jnp.float32

    # ---------------- host-side restructuring (built directly in bf16) -------
    # Fold (1+eps)*self into the adjacency and block-diagonalize the gpt graphs
    # of each tile so each GIN aggregation is a single 2-D matmul.
    eye_n = jnp.eye(N, dtype=edge_dtype)
    a_hat = adj.astype(edge_dtype) + jnp.asarray(1.0 + eps, edge_dtype) * eye_n[None]
    delta = jnp.eye(gpt, dtype=edge_dtype)
    a_tiles = (a_hat.reshape(T, gpt, N, 1, N) *
               delta.reshape(1, gpt, 1, gpt, 1)).reshape(T, tile_m, tile_m)

    # Node features: bf16 MXU operand, feature dim left unpadded.
    x_tiles = x.astype(edge_dtype).reshape(T, tile_m, F)

    # SumPooling as a matmul: pool[g, n] = 1 iff node n belongs to graph g.
    pool = jnp.kron(jnp.eye(gpt, dtype=jnp.float32),
                    jnp.ones((1, N), dtype=jnp.float32)).astype(edge_dtype)

    def pad2(a, rows, cols, dtype):
        a = jnp.pad(a.astype(jnp.float32),
                    ((0, rows - a.shape[0]), (0, cols - a.shape[1])))
        return a.astype(dtype)

    # Weights as bf16 MXU operands; biases stay f32 (added post-accumulation).
    w1 = pad2(params['w1'], F, h_pad, jnp.bfloat16)
    w2 = pad2(params['w2'], h_pad, h_pad, jnp.bfloat16)
    w3 = pad2(params['w3'], h_pad, h_pad, jnp.bfloat16)
    w4 = pad2(params['w4'], h_pad, LANE, jnp.bfloat16)
    b1 = pad2(params['b1'], 1, h_pad, jnp.float32)
    b2 = pad2(params['b2'], 1, h_pad, jnp.float32)
    b3 = pad2(params['b3'], 1, h_pad, jnp.float32)
    b4 = pad2(params['b4'], 1, LANE, jnp.float32)

    # ---------------- stage 1: per-tile GIN convolutions + sum pooling -------
    hg_tiles = pl.pallas_call(
        gin_conv_kernel,
        out_shape=jax.ShapeDtypeStruct((T, gpt, h_pad), jnp.float32),
        grid=(T,),
        in_specs=[
            pl.BlockSpec((None, tile_m, tile_m), lambda t: (t, 0, 0)),  # A
            pl.BlockSpec((None, tile_m, F), lambda t: (t, 0, 0)),       # x
            pl.BlockSpec((gpt, tile_m), lambda t: (0, 0)),              # pool
            pl.BlockSpec((F, h_pad), lambda t: (0, 0)),                 # w1
            pl.BlockSpec((1, h_pad), lambda t: (0, 0)),                 # b1
            pl.BlockSpec((h_pad, h_pad), lambda t: (0, 0)),             # w2
            pl.BlockSpec((1, h_pad), lambda t: (0, 0)),                 # b2
        ],
        out_specs=pl.BlockSpec((None, gpt, h_pad), lambda t: (t, 0, 0)),
        compiler_params=pltpu.CompilerParams(
            dimension_semantics=("parallel",),     # shard tiles across TCs (v7x)
            vmem_limit_bytes=32 * 1024 * 1024,     # fits v5e/v6e/v7x scoped VMEM
        ),
    )(a_tiles, x_tiles, pool, w1, b1, w2, b2)

    hg = hg_tiles.reshape(B, h_pad)                # pooled graph features [B, H_pad]

    # ---------------- stage 2: MLP head once over all graphs (M = B) ---------
    out = pl.pallas_call(
        mlp_head_kernel,
        out_shape=jax.ShapeDtypeStruct((B, LANE), jnp.float32),
        grid=(1,),
        in_specs=[
            pl.BlockSpec((B, h_pad), lambda i: (0, 0)),                 # hg
            pl.BlockSpec((h_pad, h_pad), lambda i: (0, 0)),             # w3
            pl.BlockSpec((1, h_pad), lambda i: (0, 0)),                 # b3
            pl.BlockSpec((h_pad, LANE), lambda i: (0, 0)),              # w4
            pl.BlockSpec((1, LANE), lambda i: (0, 0)),                  # b4
        ],
        out_specs=pl.BlockSpec((B, LANE), lambda i: (0, 0)),
        compiler_params=pltpu.CompilerParams(
            vmem_limit_bytes=32 * 1024 * 1024,
        ),
    )(hg, w3, b3, w4, b4)

    # Lane-dense [B, 128] slab -> real [B, 1] output is column 0.
    return out[:, :1]


def gin_reference(adj, x, p):
    """Pure-JAX float32 reference with identical semantics (for verification)."""
    agg1 = jnp.einsum('bij,bjf->bif', adj, x) + x
    h1 = jax.nn.relu(jnp.einsum('bnf,fh->bnh', agg1, p['w1']) + p['b1'])
    agg2 = jnp.einsum('bij,bjh->bih', adj, h1) + h1
    h2 = jax.nn.relu(jnp.einsum('bnh,hk->bnk', agg2, p['w2']) + p['b2'])
    hg = jnp.sum(h2, axis=1)
    z = jax.nn.relu(hg @ p['w3'] + p['b3'])
    return jax.nn.sigmoid(z @ p['w4'] + p['b4'])


if __name__ == "__main__":
    # 16 graphs of 16 nodes -> two parallel tiles of 128 flattened rows each.
    B, N = 16, 16
    in_feats, hidden = 8, 32

    key = jax.random.PRNGKey(0)
    k_adj, k_x, k1, k2, k3, k4 = jax.random.split(key, 6)

    # Deterministic random undirected graphs (no self-loops), dense adjacency.
    r = jax.random.uniform(k_adj, (B, N, N))
    a = (r < 0.3).astype(jnp.float32)
    adj = jnp.clip(a + jnp.transpose(a, (0, 2, 1)), 0.0, 1.0)
    adj = adj * (1.0 - jnp.eye(N, dtype=jnp.float32)[None, :, :])

    x = jax.random.normal(k_x, (B, N, in_feats), dtype=jnp.float32)

    def linear_params(k, fan_in, fan_out):
        kw, kb = jax.random.split(k)
        bound = 1.0 / jnp.sqrt(fan_in)
        w = jax.random.uniform(kw, (fan_in, fan_out), minval=-bound, maxval=bound,
                               dtype=jnp.float32)
        b = jax.random.uniform(kb, (1, fan_out), minval=-bound, maxval=bound,
                               dtype=jnp.float32)
        return w, b

    w1, b1 = linear_params(k1, in_feats, hidden)   # conv1.apply_func
    w2, b2 = linear_params(k2, hidden, hidden)     # conv2.apply_func
    w3, b3 = linear_params(k3, hidden, hidden)     # fc1
    w4, b4 = linear_params(k4, hidden, 1)          # fc2
    params = dict(w1=w1, b1=b1, w2=w2, b2=b2, w3=w3, b3=b3, w4=w4, b4=b4)

    out = jax.block_until_ready(gin_forward(adj, x, params))

    with jax.default_matmul_precision("highest"):
        ref = jax.block_until_ready(gin_reference(adj, x, params))

    assert out.shape == (B, 1), out.shape
    # Matmul operands are bf16 (f32 accumulation), so compare against the f32
    # reference at bf16-operand tolerance (errors land on sigmoid outputs).
    assert jnp.allclose(out, ref, atol=2e-2), (out, ref)

    print("KERNEL_OK")
</pallas_src>

<mosaic_0001>
module attributes {stable_mosaic.version = 11 : i64} {
  func.func @gin_conv_kernel(%arg0: i32, %arg1: memref<1x128x128xbf16, #tpu.memory_space<vmem>>, %arg2: memref<1x128x8xbf16, #tpu.memory_space<vmem>>, %arg3: memref<8x128xbf16, #tpu.memory_space<vmem>>, %arg4: memref<8x128xbf16, #tpu.memory_space<vmem>>, %arg5: memref<1x128xf32, #tpu.memory_space<vmem>>, %arg6: memref<128x128xbf16, #tpu.memory_space<vmem>>, %arg7: memref<1x128xf32, #tpu.memory_space<vmem>>, %arg8: memref<1x8x128xf32, #tpu.memory_space<vmem>>) attributes {dimension_semantics = [#tpu.dimension_semantics<parallel>], iteration_bounds = array<i64: 2>, scalar_prefetch = 0 : i64, scratch_operands = 0 : i64, tpu.core_type = #tpu.core_type<tc>, window_params = [{transform_indices = @transform_0, window_bounds = array<i64: 1, 128, 128>}, {transform_indices = @transform_1, window_bounds = array<i64: 1, 128, 8>}, {pipeline_mode = #tpu.pipeline_mode<synchronous>, transform_indices = @transform_2, window_bounds = array<i64: 8, 128>}, {pipeline_mode = #tpu.pipeline_mode<synchronous>, transform_indices = @transform_3, window_bounds = array<i64: 8, 128>}, {pipeline_mode = #tpu.pipeline_mode<synchronous>, transform_indices = @transform_4, window_bounds = array<i64: 1, 128>}, {pipeline_mode = #tpu.pipeline_mode<synchronous>, transform_indices = @transform_5, window_bounds = array<i64: 128, 128>}, {pipeline_mode = #tpu.pipeline_mode<synchronous>, transform_indices = @transform_6, window_bounds = array<i64: 1, 128>}, {transform_indices = @transform_7, window_bounds = array<i64: 1, 8, 128>}]} {
    %c0 = arith.constant 0 : index
    %c0_0 = arith.constant 0 : index
    %c0_1 = arith.constant 0 : index
    %0 = vector.load %arg1[%c0, %c0_0, %c0_1] : memref<1x128x128xbf16, #tpu.memory_space<vmem>>, vector<1x128x128xbf16>
    %1 = vector.shape_cast %0 : vector<1x128x128xbf16> to vector<128x128xbf16>
    %c0_2 = arith.constant 0 : index
    %c0_3 = arith.constant 0 : index
    %c0_4 = arith.constant 0 : index
    %2 = vector.load %arg2[%c0_2, %c0_3, %c0_4] : memref<1x128x8xbf16, #tpu.memory_space<vmem>>, vector<1x128x8xbf16>
    %3 = vector.shape_cast %2 : vector<1x128x8xbf16> to vector<128x8xbf16>
    %cst = arith.constant dense<0.000000e+00> : vector<128x8xf32>
    %4 = tpu.matmul %1, %3, %cst {dimension_numbers = #tpu.dot_dimension_numbers<[1], [0], [0], [1], [0, 0, 1, 1], [], []>} : vector<128x128xbf16>, vector<128x8xbf16>, vector<128x8xf32> -> vector<128x8xf32>
    %5 = arith.truncf %4 : vector<128x8xf32> to vector<128x8xbf16>
    %c0_5 = arith.constant 0 : index
    %c0_6 = arith.constant 0 : index
    %6 = vector.load %arg4[%c0_5, %c0_6] : memref<8x128xbf16, #tpu.memory_space<vmem>>, vector<8x128xbf16>
    %cst_7 = arith.constant dense<0.000000e+00> : vector<128x128xf32>
    %7 = tpu.matmul %5, %6, %cst_7 {dimension_numbers = #tpu.dot_dimension_numbers<[1], [0], [0], [1], [0, 0, 1, 1], [], []>} : vector<128x8xbf16>, vector<8x128xbf16>, vector<128x128xf32> -> vector<128x128xf32>
    %c0_8 = arith.constant 0 : index
    %c0_9 = arith.constant 0 : index
    %8 = vector.load %arg5[%c0_8, %c0_9] : memref<1x128xf32, #tpu.memory_space<vmem>>, vector<1x128xf32>
    %9 = vector.broadcast %8 : vector<1x128xf32> to vector<128x128xf32>
    %10 = arith.addf %7, %9 : vector<128x128xf32>
    %cst_10 = arith.constant 0.000000e+00 : f32
    %11 = vector.broadcast %cst_10 : f32 to vector<128x128xf32>
    %12 = arith.maximumf %10, %11 : vector<128x128xf32>
    %c0_11 = arith.constant 0 : index
    %c0_12 = arith.constant 0 : index
    %c0_13 = arith.constant 0 : index
    %13 = vector.load %arg1[%c0_11, %c0_12, %c0_13] : memref<1x128x128xbf16, #tpu.memory_space<vmem>>, vector<1x128x128xbf16>
    %14 = vector.shape_cast %13 : vector<1x128x128xbf16> to vector<128x128xbf16>
    %15 = arith.truncf %12 : vector<128x128xf32> to vector<128x128xbf16>
    %cst_14 = arith.constant dense<0.000000e+00> : vector<128x128xf32>
    %16 = tpu.matmul %14, %15, %cst_14 {dimension_numbers = #tpu.dot_dimension_numbers<[1], [0], [0], [1], [0, 0, 1, 1], [], []>} : vector<128x128xbf16>, vector<128x128xbf16>, vector<128x128xf32> -> vector<128x128xf32>
    %17 = arith.truncf %16 : vector<128x128xf32> to vector<128x128xbf16>
    %c0_15 = arith.constant 0 : index
    %c0_16 = arith.constant 0 : index
    %18 = vector.load %arg6[%c0_15, %c0_16] : memref<128x128xbf16, #tpu.memory_space<vmem>>, vector<128x128xbf16>
    %cst_17 = arith.constant dense<0.000000e+00> : vector<128x128xf32>
    %19 = tpu.matmul %17, %18, %cst_17 {dimension_numbers = #tpu.dot_dimension_numbers<[1], [0], [0], [1], [0, 0, 1, 1], [], []>} : vector<128x128xbf16>, vector<128x128xbf16>, vector<128x128xf32> -> vector<128x128xf32>
    %c0_18 = arith.constant 0 : index
    %c0_19 = arith.constant 0 : index
    %20 = vector.load %arg7[%c0_18, %c0_19] : memref<1x128xf32, #tpu.memory_space<vmem>>, vector<1x128xf32>
    %21 = vector.broadcast %20 : vector<1x128xf32> to vector<128x128xf32>
    %22 = arith.addf %19, %21 : vector<128x128xf32>
    %cst_20 = arith.constant 0.000000e+00 : f32
    %23 = vector.broadcast %cst_20 : f32 to vector<128x128xf32>
    %24 = arith.maximumf %22, %23 : vector<128x128xf32>
    %c0_21 = arith.constant 0 : index
    %c0_22 = arith.constant 0 : index
    %25 = vector.load %arg3[%c0_21, %c0_22] : memref<8x128xbf16, #tpu.memory_space<vmem>>, vector<8x128xbf16>
    %26 = arith.truncf %24 : vector<128x128xf32> to vector<128x128xbf16>
    %cst_23 = arith.constant dense<0.000000e+00> : vector<8x128xf32>
    %27 = tpu.matmul %25, %26, %cst_23 {dimension_numbers = #tpu.dot_dimension_numbers<[1], [0], [0], [1], [0, 0, 1, 1], [], []>} : vector<8x128xbf16>, vector<128x128xbf16>, vector<8x128xf32> -> vector<8x128xf32>
    %c0_24 = arith.constant 0 : index
    %c0_25 = arith.constant 0 : index
    %c0_26 = arith.constant 0 : index
    %28 = vector.load %arg8[%c0_24, %c0_25, %c0_26] : memref<1x8x128xf32, #tpu.memory_space<vmem>>, vector<1x8x128xf32>
    %29 = vector.shape_cast %28 : vector<1x8x128xf32> to vector<8x128xf32>
    %30 = vector.shape_cast %27 : vector<8x128xf32> to vector<1x8x128xf32>
    tpu.vector_store %arg8[%c0_24, %c0_25, %c0_26], %30 {strides = array<i32>} : memref<1x8x128xf32, #tpu.memory_space<vmem>>, vector<1x8x128xf32>,
    return
  }
  func.func @transform_0(%arg0: i32) -> (i32, i32, i32) {
    %c0_i32 = arith.constant 0 : i32
    %c0_i32_0 = arith.constant 0 : i32
    %c0_i32_1 = arith.constant 0 : i32
    return %arg0, %c0_i32, %c0_i32_0 : i32, i32, i32
  }
  func.func @transform_1(%arg0: i32) -> (i32, i32, i32) {
    %c0_i32 = arith.constant 0 : i32
    %c0_i32_0 = arith.constant 0 : i32
    %c0_i32_1 = arith.constant 0 : i32
    return %arg0, %c0_i32, %c0_i32_0 : i32, i32, i32
  }
  func.func @transform_2(%arg0: i32) -> (i32, i32) {
    %c0_i32 = arith.constant 0 : i32
    %c0_i32_0 = arith.constant 0 : i32
    %c0_i32_1 = arith.constant 0 : i32
    return %c0_i32, %c0_i32_0 : i32, i32
  }
  func.func @transform_3(%arg0: i32) -> (i32, i32) {
    %c0_i32 = arith.constant 0 : i32
    %c0_i32_0 = arith.constant 0 : i32
    %c0_i32_1 = arith.constant 0 : i32
    return %c0_i32, %c0_i32_0 : i32, i32
  }
  func.func @transform_4(%arg0: i32) -> (i32, i32) {
    %c0_i32 = arith.constant 0 : i32
    %c0_i32_0 = arith.constant 0 : i32
    %c0_i32_1 = arith.constant 0 : i32
    return %c0_i32, %c0_i32_0 : i32, i32
  }
  func.func @transform_5(%arg0: i32) -> (i32, i32) {
    %c0_i32 = arith.constant 0 : i32
    %c0_i32_0 = arith.constant 0 : i32
    %c0_i32_1 = arith.constant 0 : i32
    return %c0_i32, %c0_i32_0 : i32, i32
  }
  func.func @transform_6(%arg0: i32) -> (i32, i32) {
    %c0_i32 = arith.constant 0 : i32
    %c0_i32_0 = arith.constant 0 : i32
    %c0_i32_1 = arith.constant 0 : i32
    return %c0_i32, %c0_i32_0 : i32, i32
  }
  func.func @transform_7(%arg0: i32) -> (i32, i32, i32) {
    %c0_i32 = arith.constant 0 : i32
    %c0_i32_0 = arith.constant 0 : i32
    %c0_i32_1 = arith.constant 0 : i32
    return %arg0, %c0_i32, %c0_i32_0 : i32, i32, i32
  }
}

</mosaic_0001>

<bundles_post_ra>
// kernel: tpu_custom_call.1
= control target key start
LH: loop header
LB: loop body
LE: loop exit
PB: predicated region body
PF: predicated region fallthrough
CT: control target
= control target key end

     0   :  { %12 = vsyncpa [#allocation3], 0  ;;  %s1821_s0 = inlined_call_operand.vmem [shape: bf16[2,128,128], index: 0, kind: input, shape index: {}]   ;;  %s1822_s1 = inlined_call_operand.vmem [shape: bf16[2,128,8], index: 1, kind: input, shape index: {}]   ;;  %s1823_s2 = inlined_call_operand.vmem [shape: bf16[8,128], index: 2, kind: input, shape index: {}]   ;;  %s1824_s3 = inlined_call_operand.vmem [shape: bf16[8,128], index: 3, kind: input, shape index: {}]   ;;  %s1825_s4 = inlined_call_operand.vmem [shape: f32[1,128], index: 4, kind: input, shape index: {}]   ;;  %s1826_s5 = inlined_call_operand.hbm [shape: bf16[128,128], index: 5, kind: input, shape index: {}]   ;;  %s1827_s6 = inlined_call_operand.vmem [shape: f32[1,128], index: 6, kind: input, shape index: {}]   ;;  %s1828_s7 = inlined_call_operand.hbm [shape: f32[2,8,128], index: 7, kind: output, shape index: {}]  }
   0x1   :  { %13 = vsyncpa [#allocation4], 0 }
   0x2   :  { %15 = vsyncpa [#allocation4 + $0x1], 0  ;;  %s1612_s24 = smov 0   ;;  %s1614_s25 = smov 0  }
   0x3   :  { %s1616_s26 = smov 0   ;;  %s1618_s27 = smov 0  }
   0x4 LB: > { %s1633_s28 = sadd.s32 4294967295, %s1564_s27   ;;  %s1140_s29 = sadd.s32 4294967294, %s1564_s27   ;;  %s1564_s27 = sphi %s1618_s27, %s1844_s27   ;;  %s1560_s26 = sphi %s1616_s26, %s1843_s26   ;;  %s1556_s25 = sphi %s1614_s25, %s1842_s25   ;;  %s1552_s24 = sphi %s1612_s24, %s1841_s24  }
   0x5   : > { %s1637_s30 = sadd.s32 1, %s1564_s27   ;;  %s185_s8 = sadd.s32 1, %s1560_s26 }
   0x6   : > { %s182_s9 = ssub.s32 %s1564_s27, %s1637_s30  ;;  %p195_p0 = scmp.ne.s32.totalorder %s1560_s26, %s1556_s25 }
   0x7   : > { %p183_p1 = scmp.eq.s32.totalorder %s182_s9, 0  ;;  %p196_p2 = scmp.eq.s32.totalorder %s1633_s28, 1 }
   0x8   : > { %p201_p3 = scmp.ne.s32.totalorder %s1556_s25, %s1552_s24  ;;  %p202_p4 = scmp.eq.s32.totalorder %s1140_s29, 1 }
   0x9   : > { %s1648_s10 = scalar_select %p183_p1, %s1560_s26, %s185_s8  }
   0xa   : > { %p1650_p5 = por %p196_p2, %p195_p0  ;;  %p1654_p6 = por %p202_p4, %p201_p3 }
   0xb   : > { %p1141_p7 = scmp.ge.s32.totalorder %s1564_s27, 1  ;;  %p209_p8 = scmp.lt.s32.totalorder %s1564_s27, 3 }
   0xc   : > { %s1832_s11 = scalar_select %p1650_p5, 1, 0 }
   0xd   : > { %s1833_s12 = scalar_select %p1654_p6, 1, 0 }
   0xe   : > { %p1829_p9 = scmp.eq.s32.totalorder %s1633_s28, 0  ;;  %p1661_p10 = pnand %p1141_p7, %p209_p8 }
   0xf   : > { %s1566_s14 = smov [#allocation2]   ;;  %s1470_s19 = scalar_lea.hbm %s1826_s5, 1024 }
  0x10   : > { %s1834_s13 = scalar_select %p1661_p10, 1, 0 }
  0x11   : > { %s230_s15 = sshll.u32 %s1566_s14, 4  ;;  %p1398_p11 = pneg %p1661_p10  ;;  %s231_s15 = int_to_ptr.vmem [resolvable:$true] %s230_s15 }
  0x12   : > { %p1471_p13 = scmp.ne.s32.totalorder %s1826_s5, %s1470_s19  ;;  %p1477_p3 = scmp.lt.u32.totalorder %s1470_s19, %s1826_s5 }
  0x13   : > { %p1669_p12 = pnand %p1829_p9, %p1398_p11 }
  0x15   : > { %p1472_p0 = pneg %p1669_p12 }
  0x17   : > { %p1473_p1 = pnand %p1472_p0, %p1471_p13 }
  0x19   : > { %p1474_p2 = pneg %p1473_p1 }
  0x1b   : > { %p1479_p4 = pnand %p1477_p3, %p1474_p2 }
  0x1d   : > { %1482 = shalt.err (!%p1479_p4)
}
  0x1e   : > { %s1483_s29 = scalar_lea.vmem %s231_s15, 1024  ;;  %p1491_p9 = scmp.lt.s32.totalorder %s231_s15, %s231_s15 }
  0x1f   : > { %p1484_p7 = scmp.ne.s32.totalorder %s231_s15, %s1483_s29  ;;  %p1492_p6 = scmp.lt.s32.totalorder %s1483_s29, %s1483_s29 }
  0x21   : > { %p1486_p8 = pnand %p1484_p7, %p1472_p0  ;;  %p1493_p5 = por %p1492_p6, %p1491_p9 }
  0x23   : > { %p1487_p11 = pneg %p1486_p8 }
  0x25   : > { %p1494_p10 = pnand %p1493_p5, %p1487_p11 }
  0x27   : > { %1497 = shalt.err (!%p1494_p10)
}
  0x28   : > { %s1567_s8 = smov 64   ;;  %s1568_s9 = smov 4  }
  0x29   : > { %1401 = dma.hbm_to_vmem [thread:$0]  (!%p1669_p12), %s1826_s5, 1024, %s231_s15, [#allocation3], %s1567_s8, %s1567_s8, %s1568_s9  }
  0x2a   : > { %p1836_p13 = scmp.ne.s32.totalorder %s1834_s13, 0 }
  0x2b   : > { %p1837_p1 = scmp.eq.s32.totalorder (!%p1836_p13), %s1633_s28, 0 }
  0x2c   : > { %265 = sbr.rel (%p1836_p13) target bundleno = 1259 (0x4eb), region = 48 }
  0x33   : > { %1543 = dma.done.wait (%p1837_p1), [#allocation3], 1024   ;;  %p1838_p0 = pmov %p1837_p1 }
  0x34   : > { %p302_p5 = scmp.lt.s32.totalorder %s1633_s28, 1  ;;  %v546_v16 = vld [vmem:[%s1824_s3] sm:$0xf]  ;;  %vm579_vm0 = vcmask 1043456   ;;  %vm554_vm1 = vcmask 64512   ;;  %v1463_v43 = vld [vmem:[#allocation2 + $0x8] sm:$0xff]  }
  0x35   : > { %1545 = vsyncadd (%p1838_p0), [#allocation3], 4294966272  ;;  %1391 = vmatprep.subr.msk.bf16.mxu1 %vm579_vm0, %v546_v16  ;;  %v581_v17 = vsel %vm579_vm0, %v546_v16, 0  ;;  %v1462_v42 = vld [vmem:[#allocation2] sm:$0xff]   ;;  %v1464_v44 = vld [vmem:[#allocation2 + $0x10] sm:$0xff]   ;;  %vm1570_vm2 = vmmov 0  }
  0x36   : > { %s303_s18 = scalar_select %p302_p5, %s1633_s28, 1  ;;  %1290 = vmatpush3.bf16.msra.mxu1 %v581_v17  ;;  %v1465_v45 = vld [vmem:[#allocation2 + $0x18] sm:$0xff]   ;;  %v1466_v46 = vld [vmem:[#allocation2 + $0x20] sm:$0xff]   ;;  %v1467_v47 = vld [vmem:[#allocation2 + $0x28] sm:$0xff]  }
  0x37   : > { %v1468_v48 = vld [vmem:[#allocation2 + $0x30] sm:$0xff]   ;;  %v1167_v49 = vld [vmem:[%s1825_s4] ss:$0 sm:$0xff]  ;;  %s299_s20 = sand.u32 1, %s1556_s25   ;;  %s1186_s15 = sshll.u32 %s1633_s28, 7 }
  0x38   : > { %s1189_s19 = sshll.u32 %s303_s18, 6  ;;  %s1146_s16 = sshll.u32 %s299_s20, 3 }
  0x39   : > { %s311_s21 = scalar_lea.vmem %s1822_s1, %s1189_s19  ;;  %s1703_s22 = scalar_lea.vmem %s1821_s0, %s1189_s19 }
  0x3a   : > { %v1446_v0 = vld [vmem:[%s311_s21] sm:$0xff]   ;;  %v1447_v1 = vld [vmem:[%s311_s21 + $0x8] sm:$0xff]   ;;  %v1448_v2 = vld [vmem:[%s311_s21 + $0x10] sm:$0xff]   ;;  %s1781_s29 = scalar_lea.hbm %s1828_s7, %s1186_s15  ;;  %s1044_s8 = scalar_lea.sflag [#allocation4], %s299_s20 }
  0x3b   : > { %1257 = vmatprep.subr.bf16.mxu0 %v1446_v0  ;;  %v1449_v3 = vld [vmem:[%s311_s21 + $0x18] sm:$0xff]   ;;  %v1706_v4 = vld [vmem:[%s1703_s22] sm:$0xff]   ;;  %v1451_v6 = vld [vmem:[%s311_s21 + $0x28] sm:$0xff]   ;;  %p1839_p9 = scmp.ne.s32.totalorder %s1832_s11, 0  ;;  %s1571_s28 = smov [#allocation5]  }
  0x3c   : > { %1258 = vmatpush3.bf16.msra.mxu0 %v1446_v0  ;;  %1273 = vmatprep.mubr.bf16.mxu0 %v1706_v4  ;;  %v1450_v5 = vld [vmem:[%s311_s21 + $0x20] sm:$0xff]   ;;  %v1452_v7 = vld [vmem:[%s311_s21 + $0x30] sm:$0xff]   ;;  %v1453_v8 = vld [vmem:[%s311_s21 + $0x38] sm:$0xff]   ;;  %s301_s21 = scalar_lea.vmem [#allocation5], %s1146_s16  ;;  %s1502_s14 = sshll.u32 %s1571_s28, 4  ;;  %s1503_s14 = int_to_ptr.vmem [resolvable:$false] %s1502_s14 }
  0x3d   : > { %1259 = vmatprep.subr.bf16.mxu0 %v1447_v1  ;;  %v1710_v9 = vld [vmem:[%s1703_s22 + $0x8] sm:$0xff]   ;;  %v1713_v10 = vld [vmem:[%s1703_s22 + $0x10] sm:$0xff]   ;;  %v1718_v11 = vld [vmem:[%s1703_s22 + $0x18] sm:$0xff]   ;;  %s1057_s13 = sshll.u32 %s301_s21, 4  ;;  %s1504_s17 = scalar_lea.vmem %s1503_s14, 256  ;;  %s1776_s13 = int_to_ptr.vmem [resolvable:$true] %s1057_s13 }
  0x3e   : > { %v1721_v12 = vld [vmem:[%s1703_s22 + $0x20] sm:$0xff]   ;;  %v1726_v13 = vld [vmem:[%s1703_s22 + $0x28] sm:$0xff]   ;;  %v1729_v14 = vld [vmem:[%s1703_s22 + $0x30] sm:$0xff]   ;;  %s1498_s9 = scalar_lea.vmem %s1776_s13, 128  ;;  %p1505_p2 = scmp.lt.s32.totalorder %s1776_s13, %s1503_s14 }
  0x3f   : > { %v1734_v15 = vld [vmem:[%s1703_s22 + $0x38] sm:$0xff]   ;;  %p1499_p6 = scmp.ne.s32.totalorder %s1776_s13, %s1498_s9  ;;  %p1506_p3 = scmp.lt.s32.totalorder %s1504_s17, %s1498_s9 }
  0x40   : > { %1260 = vmatpush3.bf16.msra.mxu0 %v1447_v1 }
  0x41   : > { %1261 = vmatprep.subr.bf16.mxu0 %v1448_v2  ;;  %p1500_p10 = pnand %p1499_p6, %p1839_p9  ;;  %p1507_p4 = por %p1506_p3, %p1505_p2 }
  0x43   : > { %p1501_p12 = pneg %p1500_p10 }
  0x44   : > { %1262 = vmatpush3.bf16.msra.mxu0 %v1448_v2 }
  0x45   : > { %1263 = vmatprep.subr.bf16.mxu0 %v1449_v3  ;;  %p1508_p7 = pnand %p1507_p4, %p1501_p12 }
  0x48   : > { %1264 = vmatpush3.bf16.msra.mxu0 %v1449_v3 }
  0x49   : > { %1265 = vmatprep.subr.bf16.mxu0 %v1450_v5 }
  0x4c   : > { %1266 = vmatpush3.bf16.msra.mxu0 %v1450_v5 }
  0x4d   : > { %1267 = vmatprep.subr.bf16.mxu0 %v1451_v6 }
  0x50   : > { %1268 = vmatpush3.bf16.msra.mxu0 %v1451_v6 }
  0x51   : > { %1269 = vmatprep.subr.bf16.mxu0 %v1452_v7 }
  0x54   : > { %1270 = vmatpush3.bf16.msra.mxu0 %v1452_v7 }
  0x55   : > { %1271 = vmatprep.subr.bf16.mxu0 %v1453_v8 }
  0x58   : > { %1272 = vmatpush3.bf16.msra.mxu0 %v1453_v8 }
  0x59   : > { %1339 = vmatprep.subr.bf16.mxu0 %v1462_v42 }
  0x5b   : > { %1274 = vmatmul.mubr.bf16.vlgmr.msra.gmra.mrb[0].mxu0 %v1710_v9 }
  0x5c   : > { %1277 = vmatprep.mubr.bf16.mxu0 %v1713_v10  ;;  %1340 = vmatpush3.bf16.msra.mxu0 %v1462_v42 }
  0x5d   : > { %1341 = vmatprep.subr.bf16.mxu0 %v1463_v43 }
  0x60   : > { %1342 = vmatpush3.bf16.msra.mxu0 %v1463_v43 }
  0x61   : > { %1343 = vmatprep.subr.bf16.mxu0 %v1464_v44 }
  0x63   : > { %1278 = vmatmul.mubr.bf16.gmra.mrb[4].mxu0 %v1718_v11 }
  0x64   : > { %1281 = vmatprep.mubr.bf16.mxu0 %v1721_v12  ;;  %1344 = vmatpush3.bf16.msra.mxu0 %v1464_v44 }
  0x65   : > { %1345 = vmatprep.subr.bf16.mxu0 %v1465_v45 }
  0x68   : > { %1346 = vmatpush3.bf16.msra.mxu0 %v1465_v45 }
  0x69   : > { %1347 = vmatprep.subr.bf16.mxu0 %v1466_v46 }
  0x6b   : > { %1282 = vmatmul.mubr.bf16.gmra.mrb[8].mxu0 %v1726_v13 }
  0x6c   : > { %1285 = vmatprep.mubr.bf16.mxu0 %v1729_v14  ;;  %1348 = vmatpush3.bf16.msra.mxu0 %v1466_v46 }
  0x6d   : > { %1349 = vmatprep.subr.bf16.mxu0 %v1467_v47 }
  0x70   : > { %1350 = vmatpush3.bf16.msra.mxu0 %v1467_v47 }
  0x71   : > { %1351 = vmatprep.subr.bf16.mxu0 %v1468_v48 }
  0x73   : > { %1286 = vmatmul.mubr.bf16.gmra.mrb[12].mxu0 %v1734_v15 }
  0x74   : > { %1352 = vmatpush3.bf16.msra.mxu0 %v1468_v48 }
 0x12e   : > { %v1275_v18 = vpop.f32.mrb[0].mxu0 }
 0x12f   : > { %v475_v19 = vpop.f32.mrb[1].mxu0 }
 0x130   : > { %v1276_v20 = vpop.f32.mrb[2].mxu0 }
 0x131   : > { %v539_v21 = vpack.c.bf16 %v1276_v20, %v1275_v18  ;;  %v478_v22 = vpop.f32.mrb[3].mxu0 }
 0x132   : > { %v538_v23 = vpack.c.bf16 %v478_v22, %v475_v19 }
 0x134   : > { %1291 = vmatprep.mubr.msk.bf16.mxu1 %vm554_vm1, %v538_v23 }
 0x135   : > { %1292 = vmatmul.mubr.msk.bf16.vlgmr.msra.gmra.mrb[0].mxu1 %vm554_vm1, %v539_v21 }
 0x136   : > { %v1279_v24 = vpop.f32.mrb[4].mxu0 }
 0x137   : > { %v491_v25 = vpop.f32.mrb[5].mxu0 }
 0x138   : > { %v1280_v26 = vpop.f32.mrb[6].mxu0 }
 0x139   : > { %v541_v27 = vpack.c.bf16 %v1280_v26, %v1279_v24  ;;  %v494_v28 = vpop.f32.mrb[7].mxu0 }
 0x13a   : > { %v540_v29 = vpack.c.bf16 %v494_v28, %v491_v25 }
 0x13c   : > { %1295 = vmatprep.mubr.msk.bf16.mxu1 %vm554_vm1, %v540_v29 }
 0x13d   : > { %1296 = vmatmul.mubr.msk.bf16.gmra.mrb[4].mxu1 %vm554_vm1, %v541_v27 }
 0x13e   : > { %v1283_v30 = vpop.f32.mrb[8].mxu0 }
 0x13f   : > { %v507_v31 = vpop.f32.mrb[9].mxu0 }
 0x140   : > { %v1284_v32 = vpop.f32.mrb[10].mxu0 }
 0x141   : > { %v543_v33 = vpack.c.bf16 %v1284_v32, %v1283_v30  ;;  %v510_v34 = vpop.f32.mrb[11].mxu0 }
 0x142   : > { %v542_v35 = vpack.c.bf16 %v510_v34, %v507_v31 }
 0x144   : > { %1299 = vmatprep.mubr.msk.bf16.mxu1 %vm554_vm1, %v542_v35 }
 0x145   : > { %1300 = vmatmul.mubr.msk.bf16.gmra.mrb[8].mxu1 %vm554_vm1, %v543_v33 }
 0x146   : > { %v1287_v36 = vpop.f32.mrb[12].mxu0 }
 0x147   : > { %v523_v37 = vpop.f32.mrb[13].mxu0 }
 0x148   : > { %v1288_v38 = vpop.f32.mrb[14].mxu0 }
 0x149   : > { %v545_v39 = vpack.c.bf16 %v1288_v38, %v1287_v36  ;;  %v526_v40 = vpop.f32.mrb[15].mxu0 }
 0x14a   : > { %v544_v41 = vpack.c.bf16 %v526_v40, %v523_v37 }
 0x14c   : > { %1303 = vmatprep.mubr.msk.bf16.mxu1 %vm554_vm1, %v544_v41 }
 0x14d   : > { %1304 = vmatmul.mubr.msk.bf16.gmra.mrb[12].mxu1 %vm554_vm1, %v545_v39 }
 0x14e   : > { %1323 = vmatprep.mubr.bf16.mxu1 %v1706_v4 }
 0x208   : > { %v1293_v50 = vpop.f32.mrb[0].mxu1 }
 0x209   : > { %v626_v51 = vadd.f32 %v1293_v50, %v1167_v49  ;;  %v617_v52 = vpop.f32.mrb[1].mxu1 }
 0x20a   : > { %v618_v53 = vadd.f32 %v1167_v49, %v617_v52  ;;  %v1294_v54 = vpop.f32.mrb[2].mxu1 }
 0x20b   : > { %v629_v55 = vadd.f32 %v1294_v54, %v1167_v49  ;;  %v620_v56 = vpop.f32.mrb[3].mxu1  ;;  %v682_v58 = vmax.f32 %v626_v51, 0.0 }
 0x20c   : > { %v621_v57 = vadd.f32 %v1167_v49, %v620_v56  ;;  %v680_v60 = vmax.f32 %v618_v53, 0.0 }
 0x20d   : > { %v683_v59 = vmax.f32 %v629_v55, 0.0 }
 0x20e   : > { %v681_v61 = vmax.f32 %v621_v57, 0.0 }
 0x20f   : > { %v697_v62 = vpack.c.bf16 %v683_v59, %v682_v58 }
 0x210   : > { %v696_v63 = vpack.c.bf16 %v681_v61, %v680_v60  ;;  %v1297_v0 = vpop.f32.mrb[4].mxu1 }
 0x211   : > { %v642_v1 = vadd.f32 %v1297_v0, %v1167_v49  ;;  %v633_v2 = vpop.f32.mrb[5].mxu1 }
 0x212   : > { %v634_v3 = vadd.f32 %v1167_v49, %v633_v2  ;;  %v1298_v4 = vpop.f32.mrb[6].mxu1  ;;  %1307 = vmatprep.subr.bf16.mxu1 %v696_v63 }
 0x213   : > { %v645_v5 = vadd.f32 %v1298_v4, %v1167_v49  ;;  %v636_v6 = vpop.f32.mrb[7].mxu1  ;;  %1308 = vmatpush3.bf16.msra.mxu1 %v696_v63  ;;  %v686_v8 = vmax.f32 %v642_v1, 0.0  ;;  %v1176_v4 = vld [vmem:[%s1827_s6] ss:$0 sm:$0xff] }
 0x214   : > { %v637_v7 = vadd.f32 %v1167_v49, %v636_v6  ;;  %1309 = vmatprep.subr.bf16.mxu1 %v697_v62  ;;  %v684_v17 = vmax.f32 %v634_v3, 0.0  ;;  %v1569_v3 = vmov 0.0  }
 0x215   : > { %v687_v16 = vmax.f32 %v645_v5, 0.0 }
 0x216   : > { %v685_v18 = vmax.f32 %v637_v7, 0.0 }
 0x217   : > { %v699_v19 = vpack.c.bf16 %v687_v16, %v686_v8  ;;  %1310 = vmatpush3.bf16.msra.mxu1 %v697_v62 }
 0x218   : > { %v698_v20 = vpack.c.bf16 %v685_v18, %v684_v17  ;;  %v1301_v21 = vpop.f32.mrb[8].mxu1 }
 0x219   : > { %v658_v22 = vadd.f32 %v1301_v21, %v1167_v49  ;;  %v649_v23 = vpop.f32.mrb[9].mxu1 }
 0x21a   : > { %v650_v24 = vadd.f32 %v1167_v49, %v649_v23  ;;  %v1302_v25 = vpop.f32.mrb[10].mxu1  ;;  %1311 = vmatprep.subr.bf16.mxu1 %v698_v20 }
 0x21b   : > { %v661_v26 = vadd.f32 %v1302_v25, %v1167_v49  ;;  %v652_v27 = vpop.f32.mrb[11].mxu1  ;;  %1312 = vmatpush3.bf16.msra.mxu1 %v698_v20  ;;  %v690_v29 = vmax.f32 %v658_v22, 0.0 }
 0x21c   : > { %v653_v28 = vadd.f32 %v1167_v49, %v652_v27  ;;  %1313 = vmatprep.subr.bf16.mxu1 %v699_v19  ;;  %v688_v31 = vmax.f32 %v650_v24, 0.0 }
 0x21d   : > { %v691_v30 = vmax.f32 %v661_v26, 0.0 }
 0x21e   : > { %v689_v32 = vmax.f32 %v653_v28, 0.0 }
 0x21f   : > { %v701_v33 = vpack.c.bf16 %v691_v30, %v690_v29  ;;  %1314 = vmatpush3.bf16.msra.mxu1 %v699_v19 }
 0x220   : > { %v700_v34 = vpack.c.bf16 %v689_v32, %v688_v31  ;;  %v1305_v35 = vpop.f32.mrb[12].mxu1 }
 0x221   : > { %v674_v36 = vadd.f32 %v1305_v35, %v1167_v49  ;;  %v665_v37 = vpop.f32.mrb[13].mxu1 }
 0x222   : > { %v666_v38 = vadd.f32 %v1167_v49, %v665_v37  ;;  %v1306_v39 = vpop.f32.mrb[14].mxu1  ;;  %1315 = vmatprep.subr.bf16.mxu1 %v700_v34 }
 0x223   : > { %v677_v40 = vadd.f32 %v1306_v39, %v1167_v49  ;;  %v668_v41 = vpop.f32.mrb[15].mxu1  ;;  %1316 = vmatpush3.bf16.msra.mxu1 %v700_v34  ;;  %v694_v43 = vmax.f32 %v674_v36, 0.0 }
 0x224   : > { %v669_v42 = vadd.f32 %v1167_v49, %v668_v41  ;;  %1317 = vmatprep.subr.bf16.mxu1 %v701_v33  ;;  %v692_v45 = vmax.f32 %v666_v38, 0.0  ;;  %v1469_v49 = vld [vmem:[#allocation2 + $0x38] sm:$0xff]  }
 0x225   : > { %v695_v44 = vmax.f32 %v677_v40, 0.0  ;;  %1353 = vmatprep.subr.bf16.mxu0 %v1469_v49 }
 0x226   : > { %v693_v46 = vmax.f32 %v669_v42, 0.0  ;;  %1354 = vmatpush3.bf16.msra.mxu0 %v1469_v49 }
 0x227   : > { %v703_v47 = vpack.c.bf16 %v695_v44, %v694_v43  ;;  %1318 = vmatpush3.bf16.msra.mxu1 %v701_v33 }
 0x228   : > { %v702_v48 = vpack.c.bf16 %v693_v46, %v692_v45 }
 0x22a   : > { %1319 = vmatprep.subr.bf16.mxu1 %v702_v48 }
 0x22b   : > { %1320 = vmatpush3.bf16.msra.mxu1 %v702_v48 }
 0x22c   : > { %1321 = vmatprep.subr.bf16.mxu1 %v703_v47 }
 0x22f   : > { %1322 = vmatpush3.bf16.msra.mxu1 %v703_v47 }
 0x230   : > { %1371 = vmatprep.subr.bf16.mxu1 %v1569_v3 }
 0x232   : > { %1324 = vmatmul.mubr.bf16.vlgmr.msra.gmra.mrb[16].mxu1 %v1710_v9 }
 0x233   : > { %1327 = vmatprep.mubr.bf16.mxu1 %v1713_v10 }
 0x23a   : > { %1328 = vmatmul.mubr.bf16.gmra.mrb[20].mxu1 %v1718_v11 }
 0x23b   : > { %1331 = vmatprep.mubr.bf16.mxu1 %v1721_v12 }
 0x242   : > { %1332 = vmatmul.mubr.bf16.gmra.mrb[24].mxu1 %v1726_v13 }
 0x243   : > { %1335 = vmatprep.mubr.bf16.mxu1 %v1729_v14 }
 0x24a   : > { %1336 = vmatmul.mubr.bf16.gmra.mrb[28].mxu1 %v1734_v15 }
 0x24b   : > { %1387 = vmatprep.mubr.msk.bf16.mxu1 %vm1570_vm2, %v1569_v3 }
 0x305   : > { %v1325_v50 = vpop.f32.mrb[16].mxu1 }
 0x306   : > { %v738_v51 = vpop.f32.mrb[17].mxu1 }
 0x307   : > { %v1326_v52 = vpop.f32.mrb[18].mxu1 }
 0x308   : > { %v802_v53 = vpack.c.bf16 %v1326_v52, %v1325_v50  ;;  %v741_v9 = vpop.f32.mrb[19].mxu1 }
 0x309   : > { %v801_v54 = vpack.c.bf16 %v741_v9, %v738_v51 }
 0x30b   : > { %1355 = vmatprep.mubr.bf16.mxu0 %v801_v54 }
 0x30c   : > { %1356 = vmatmul.mubr.bf16.vlgmr.msra.gmra.mrb[16].mxu0 %v802_v53 }
 0x30d   : > { %v1329_v10 = vpop.f32.mrb[20].mxu1 }
 0x30e   : > { %v754_v11 = vpop.f32.mrb[21].mxu1 }
 0x30f   : > { %v1330_v12 = vpop.f32.mrb[22].mxu1 }
 0x310   : > { %v804_v55 = vpack.c.bf16 %v1330_v12, %v1329_v10  ;;  %v757_v13 = vpop.f32.mrb[23].mxu1 }
 0x311   : > { %v803_v56 = vpack.c.bf16 %v757_v13, %v754_v11 }
 0x313   : > { %1359 = vmatprep.mubr.bf16.mxu0 %v803_v56 }
 0x314   : > { %1360 = vmatmul.mubr.bf16.gmra.mrb[20].mxu0 %v804_v55 }
 0x315   : > { %v1333_v14 = vpop.f32.mrb[24].mxu1 }
 0x316   : > { %v770_v15 = vpop.f32.mrb[25].mxu1 }
 0x317   : > { %v1334_v57 = vpop.f32.mrb[26].mxu1 }
 0x318   : > { %v806_v58 = vpack.c.bf16 %v1334_v57, %v1333_v14  ;;  %v773_v59 = vpop.f32.mrb[27].mxu1 }
 0x319   : > { %v805_v60 = vpack.c.bf16 %v773_v59, %v770_v15 }
 0x31b   : > { %1363 = vmatprep.mubr.bf16.mxu0 %v805_v60 }
 0x31c   : > { %1364 = vmatmul.mubr.bf16.gmra.mrb[24].mxu0 %v806_v58 }
 0x31d   : > { %v1337_v61 = vpop.f32.mrb[28].mxu1 }
 0x31e   : > { %v786_v62 = vpop.f32.mrb[29].mxu1 }
 0x31f   : > { %v1338_v63 = vpop.f32.mrb[30].mxu1 }
 0x320   : > { %v808_v0 = vpack.c.bf16 %v1338_v63, %v1337_v61  ;;  %v789_v1 = vpop.f32.mrb[31].mxu1  ;;  %v993_v61 = vld [vmem:[%s1823_s2] sm:$0xf] }
 0x321   : > { %v807_v2 = vpack.c.bf16 %v789_v1, %v786_v62 }
 0x323   : > { %1367 = vmatprep.mubr.bf16.mxu0 %v807_v2 }
 0x324   : > { %1368 = vmatmul.mubr.bf16.gmra.mrb[28].mxu0 %v808_v0 }
 0x3df   : > { %v1357_v5 = vpop.f32.mrb[16].mxu0 }
 0x3e0   : > { %v923_v6 = vadd.f32 %v1357_v5, %v1176_v4  ;;  %v914_v7 = vpop.f32.mrb[17].mxu0 }
 0x3e1   : > { %v915_v8 = vadd.f32 %v1176_v4, %v914_v7  ;;  %v1358_v16 = vpop.f32.mrb[18].mxu0 }
 0x3e2   : > { %v926_v17 = vadd.f32 %v1358_v16, %v1176_v4  ;;  %v917_v18 = vpop.f32.mrb[19].mxu0  ;;  %v979_v20 = vmax.f32 %v923_v6, 0.0 }
 0x3e3   : > { %v918_v19 = vadd.f32 %v1176_v4, %v917_v18  ;;  %v977_v22 = vmax.f32 %v915_v8, 0.0 }
 0x3e4   : > { %v980_v21 = vmax.f32 %v926_v17, 0.0 }
 0x3e5   : > { %v978_v23 = vmax.f32 %v918_v19, 0.0 }
 0x3e6   : > { %v995_v24 = vpack.c.bf16 %v980_v21, %v979_v20 }
 0x3e7   : > { %v994_v25 = vpack.c.bf16 %v978_v23, %v977_v22  ;;  %v1361_v26 = vpop.f32.mrb[20].mxu0 }
 0x3e8   : > { %v939_v27 = vadd.f32 %v1361_v26, %v1176_v4  ;;  %v930_v28 = vpop.f32.mrb[21].mxu0 }
 0x3e9   : > { %v931_v29 = vadd.f32 %v1176_v4, %v930_v28  ;;  %v1362_v30 = vpop.f32.mrb[22].mxu0  ;;  %1372 = vmatpush3.bf16.msra.mxu1 %v994_v25 }
 0x3ea   : > { %v942_v31 = vadd.f32 %v1362_v30, %v1176_v4  ;;  %v933_v32 = vpop.f32.mrb[23].mxu0  ;;  %1373 = vmatprep.subr.bf16.mxu1 %v1569_v3  ;;  %v983_v34 = vmax.f32 %v939_v27, 0.0 }
 0x3eb   : > { %v934_v33 = vadd.f32 %v1176_v4, %v933_v32  ;;  %v981_v36 = vmax.f32 %v931_v29, 0.0 }
 0x3ec   : > { %v984_v35 = vmax.f32 %v942_v31, 0.0 }
 0x3ed   : > { %v982_v37 = vmax.f32 %v934_v33, 0.0  ;;  %1374 = vmatpush3.bf16.msra.mxu1 %v995_v24 }
 0x3ee   : > { %v997_v38 = vpack.c.bf16 %v984_v35, %v983_v34  ;;  %1375 = vmatprep.subr.bf16.mxu1 %v1569_v3 }
 0x3ef   : > { %v996_v39 = vpack.c.bf16 %v982_v37, %v981_v36  ;;  %v1365_v40 = vpop.f32.mrb[24].mxu0 }
 0x3f0   : > { %v955_v41 = vadd.f32 %v1365_v40, %v1176_v4  ;;  %v946_v42 = vpop.f32.mrb[25].mxu0 }
 0x3f1   : > { %v947_v43 = vadd.f32 %v1176_v4, %v946_v42  ;;  %v1366_v44 = vpop.f32.mrb[26].mxu0  ;;  %1376 = vmatpush3.bf16.msra.mxu1 %v996_v39 }
 0x3f2   : > { %v958_v45 = vadd.f32 %v1366_v44, %v1176_v4  ;;  %v949_v46 = vpop.f32.mrb[27].mxu0  ;;  %1377 = vmatprep.subr.bf16.mxu1 %v1569_v3  ;;  %v987_v48 = vmax.f32 %v955_v41, 0.0 }
 0x3f3   : > { %v950_v47 = vadd.f32 %v1176_v4, %v949_v46  ;;  %v985_v50 = vmax.f32 %v947_v43, 0.0 }
 0x3f4   : > { %v988_v49 = vmax.f32 %v958_v45, 0.0 }
 0x3f5   : > { %v986_v51 = vmax.f32 %v950_v47, 0.0  ;;  %1378 = vmatpush3.bf16.msra.mxu1 %v997_v38 }
 0x3f6   : > { %v999_v52 = vpack.c.bf16 %v988_v49, %v987_v48  ;;  %1379 = vmatprep.subr.bf16.mxu1 %v1569_v3 }
 0x3f7   : > { %v998_v53 = vpack.c.bf16 %v986_v51, %v985_v50  ;;  %v1369_v9 = vpop.f32.mrb[28].mxu0 }
 0x3f8   : > { %v971_v54 = vadd.f32 %v1369_v9, %v1176_v4  ;;  %v962_v10 = vpop.f32.mrb[29].mxu0 }
 0x3f9   : > { %v963_v11 = vadd.f32 %v1176_v4, %v962_v10  ;;  %v1370_v12 = vpop.f32.mrb[30].mxu0  ;;  %1380 = vmatpush3.bf16.msra.mxu1 %v998_v53 }
 0x3fa   : > { %v974_v55 = vadd.f32 %v1370_v12, %v1176_v4  ;;  %v965_v13 = vpop.f32.mrb[31].mxu0  ;;  %1381 = vmatprep.subr.bf16.mxu1 %v1569_v3  ;;  %v991_v14 = vmax.f32 %v971_v54, 0.0 }
 0x3fb   : > { %v966_v56 = vadd.f32 %v1176_v4, %v965_v13  ;;  %v989_v57 = vmax.f32 %v963_v11, 0.0 }
 0x3fc   : > { %v992_v15 = vmax.f32 %v974_v55, 0.0 }
 0x3fd   : > { %v990_v58 = vmax.f32 %v966_v56, 0.0  ;;  %1382 = vmatpush3.bf16.msra.mxu1 %v999_v52 }
 0x3fe   : > { %v1001_v59 = vpack.c.bf16 %v992_v15, %v991_v14  ;;  %1383 = vmatprep.subr.bf16.mxu1 %v1569_v3 }
 0x3ff   : > { %v1000_v60 = vpack.c.bf16 %v990_v58, %v989_v57 }
 0x401   : > { %1384 = vmatpush3.bf16.msra.mxu1 %v1000_v60 }
 0x402   : > { %1385 = vmatprep.subr.bf16.mxu1 %v1569_v3 }
 0x405   : > { %1386 = vmatpush3.bf16.msra.mxu1 %v1001_v59 }
 0x408   : > { %1388 = vmatmul.mubr.bf16.vlgmr.msra.gmra.mrb[32].mxu1 %v993_v61 }
 0x4db   : > { %v1036_v62 = vpop.f32.mrb[32].mxu1 }
 0x4dc   : > { %1042 = vst [vmem:[%s301_s21] sm:$0xff] %v1036_v62  ;;  %v1389_v63 = vpop.f32.mrb[33].mxu1 }
 0x4dd   : > { %v1039_v0 = vpop.f32.mrb[34].mxu1 }
 0x4de   : > { %1511 = shalt.err (!%p1508_p7)
}
 0x4df   : > { %s1512_s18 = scalar_lea.hbm %s1781_s29, 128  ;;  %s1516_s16 = scalar_lea.hbm %s1828_s7, 256 }
 0x4e0   : > { %p1513_p8 = scmp.ne.s32.totalorder %s1781_s29, %s1512_s18  ;;  %p1517_p1 = scmp.lt.u32.totalorder %s1781_s29, %s1828_s7 }
 0x4e1   : > { %p1518_p0 = scmp.lt.u32.totalorder %s1516_s16, %s1512_s18  ;;  %p1520_p6 = scmp.lt.u32.totalorder %s1512_s18, %s1781_s29 }
 0x4e2   : > { %p1514_p11 = pnand %p1513_p8, %p1839_p9 }
 0x4e3   : > { %p1519_p5 = por %p1518_p0, %p1517_p1 }
 0x4e4   : > { %p1515_p13 = pneg %p1514_p11 }
 0x4e5   : > { %p1521_p10 = por %p1520_p6, %p1519_p5 }
 0x4e7   : > { %p1522_p12 = pnand %p1521_p10, %p1515_p13 }
 0x4e9   : > { %1525 = shalt.err (!%p1522_p12)
}
 0x4ea   : > { %1396 = dma.vmem_to_hbm [thread:$0]  (%p1839_p9), %s1776_s13, 128, %s1781_s29, %s1044_s8   ;;  %v1390_v1 = vpop.f32.mrb[35].mxu1 }
 0x4eb PF: > { %p1408_p2 = scmp.ge.s32.totalorder %s1564_s27, 2  ;;  %s1069_s22 = sand.u32 1, %s1552_s24  }
 0x4ec   : > { %p1840_p3 = scmp.ne.s32.totalorder %s1833_s12, 0  ;;  %s1070_s23 = scalar_lea.sflag [#allocation4], %s1069_s22 }
 0x4ee   : > { %p1403_p4 = pnand %p1408_p2, %p1840_p3 }
 0x4f0   : > { %1547 = dma.done.wait (!%p1403_p4), %s1070_s23, 128  }
 0x4f1   : > { %1549 = vsyncadd (!%p1403_p4), %s1070_s23, 4294967168  ;;  %p18_p7 = scmp.ge.s32.totalorder %s1637_s30, 4   ;;  %s1841_s24 = smov %s1556_s25 }
 0x4f2   : > { %s1842_s25 = smov %s1560_s26  ;;  %s1843_s26 = smov %s1648_s10 }
 0x4f3   : > { %s1844_s27 = smov %s1637_s30  ;;  %20 = sbr.rel (!%p18_p7) target bundleno = 4 (0x4), region = 91 }
 0x4fa   :  { %1075 = vsyncpa [#allocation3], 1 }
 0x4fb   :  { %1077 = vsyncpa [#allocation3 + $0x1], 1 }
 0x4fc   :  { %1078 = vsyncpa [#allocation4], 1 }
 0x4fd   :  { %1080 = vsyncpa [#allocation4 + $0x1], 1 }

</bundles_post_ra>
